<compile_context>
chip_gen: v5e
topology: v5e:2x2
jax: 0.10.0
libtpu: 0.0.40
codegen_flags: <defaults>
</compile_context>

<pallas_src>
import functools

import jax
import jax.numpy as jnp
from jax import lax
from jax.experimental import pallas as pl
from jax.experimental.pallas import tpu as pltpu


def _lstm_chunk_kernel(x_ref, wih_ref, whh_ref, b_ref, h0_ref, c0_ref,
                       hn_ref, cn_ref, h_scr, c_scr, pre_scr):
    """One time-chunk of the LSTM recurrence (PyTorch gate order i, f, g, o).

    x_ref   : (T*B, D)   time-major flattened raw inputs for this chunk
    wih_ref : (D, 4H)    bf16  W_ih^T (gates stacked along last dim)
    whh_ref : (H, 4H)    bf16  W_hh^T
    b_ref   : (1, 4H)    f32   b_ih + b_hh
    h0_ref  : (B, H)     f32   initial hidden state
    c0_ref  : (B, H)     f32   initial cell state
    hn_ref  : (1, B, H)  f32   final hidden state (written at last chunk)
    cn_ref  : (1, B, H)  f32   final cell state
    h_scr   : (B, H)     f32   VMEM carry across grid steps
    c_scr   : (B, H)     f32   VMEM carry across grid steps
    pre_scr : (T*B, 4H)  f32   per-chunk input-projection pre-activations
    """
    B, H = h_scr.shape
    T = x_ref.shape[0] // B
    t_chunk = pl.program_id(0)

    @pl.when(t_chunk == 0)
    def _():
        h_scr[...] = h0_ref[...]
        c_scr[...] = c0_ref[...]

    # Hoisted per-chunk input projection: ONE lane-dense (T*B, D) x (D, 4H)
    # MXU matmul amortizes W_ih streaming across the T sequential steps.
    xt = jnp.tanh(x_ref[...].astype(jnp.float32))          # tanh in f32 (v5e-safe)
    pre_scr[...] = (
        jnp.dot(xt.astype(jnp.bfloat16), wih_ref[...],
                preferred_element_type=jnp.float32)
        + b_ref[...])

    w_hh = whh_ref[...]                                     # bf16, resident

    def step(tl, carry):
        h, c = carry
        # One fused (B, H) x (H, 4H) matmul per step, f32 accumulate.
        gates = (pre_scr[pl.ds(tl * B, B), :]
                 + jnp.dot(h.astype(jnp.bfloat16), w_hh,
                           preferred_element_type=jnp.float32))
        # Consume each gate slice immediately (bounded vreg live set);
        # nonlinearities and the c/h updates stay in f32.
        c = (jax.nn.sigmoid(gates[:, 1 * H:2 * H]) * c
             + jax.nn.sigmoid(gates[:, 0 * H:1 * H])
             * jnp.tanh(gates[:, 2 * H:3 * H]))
        h = jax.nn.sigmoid(gates[:, 3 * H:4 * H]) * jnp.tanh(c)
        return h, c

    # Only the short chunk loop is fully unrolled (not the whole sequence).
    h_fin, c_fin = lax.fori_loop(0, T, step, (h_scr[...], c_scr[...]),
                                 unroll=True)
    h_scr[...] = h_fin
    c_scr[...] = c_fin

    @pl.when(t_chunk == pl.num_programs(0) - 1)
    def _():
        hn_ref[0] = h_fin.astype(hn_ref.dtype)
        cn_ref[0] = c_fin.astype(cn_ref.dtype)


def _pick_time_chunk(seq_len, batch, desired):
    """Largest divisor of seq_len <= desired keeping the x-chunk sublane-aligned."""
    for t in range(min(desired, seq_len), 0, -1):
        if seq_len % t == 0 and (t * batch) % 8 == 0:
            return t
    return seq_len          # block == full array extent is always legal


@functools.partial(jax.jit, static_argnames=("time_chunk",))
def qns_embedding_forward(x_bsd, h0, c0, w_ih, w_hh, b_ih, b_hh, *, time_chunk=8):
    """Pallas equivalent of QnsEmbedding.forward(inputs, cache) -> (hn, cn).

    x_bsd : (B, S, D)   batch_first inputs (like PyTorch)
    h0,c0 : (1, B, H)   cache (num_layers=1)
    w_ih  : (4H, D), w_hh : (4H, H), b_ih/b_hh : (4H,)  -- PyTorch LSTM params
    """
    B, S, D = x_bsd.shape
    H = h0.shape[-1]
    G = 4 * H

    T = _pick_time_chunk(S, B, time_chunk)
    n_chunks = S // T

    # Time-major flattened inputs; row (s*B + b) holds x[b, s, :].  Only x
    # (width D) is relaid out -- the wide (., 4H) gate pre-activations never
    # touch HBM (projection is fused in-kernel).
    x_flat = jnp.transpose(x_bsd, (1, 0, 2)).reshape(S * B, D)

    # bf16 MXU operands; accumulate + elementwise stay f32. Gate order stays
    # PyTorch's (i, f, g, o) because the weight rows are stacked that way.
    w_ih_t = w_ih.T.astype(jnp.bfloat16)                  # (D, 4H)
    w_hh_t = w_hh.T.astype(jnp.bfloat16)                  # (H, 4H)
    bias = (b_ih.astype(jnp.float32)
            + b_hh.astype(jnp.float32)).reshape(1, G)     # (1, 4H)
    h0_f = h0[0].astype(jnp.float32)                      # (B, H)
    c0_f = c0[0].astype(jnp.float32)

    # VMEM budget: double-buffered x chunk + resident weights + scratch + states,
    # generous headroom, capped at v7x's 64 MiB physical VMEM per core.
    x_bytes = x_flat.dtype.itemsize
    est = (2 * T * B * D * x_bytes            # double-buffered x chunks
           + (D + H) * G * 2                  # bf16 weights
           + G * 4                            # bias
           + 4 * B * H * 4                    # h0/c0 + hn/cn
           + (T * B * G + 2 * B * H) * 4)     # scratch (pre + h + c)
    vmem_limit = int(min(max(2 * est + (1 << 20), 8 << 20), 64 << 20))

    cost = pl.CostEstimate(
        flops=2 * S * B * (D + H) * G,
        transcendentals=S * B * (D + 5 * H),
        bytes_accessed=(S * B * D * x_bytes + (D + H) * G * 2 + G * 4
                        + 8 * B * H * 4))

    grid_spec = pltpu.PrefetchScalarGridSpec(
        num_scalar_prefetch=0,
        grid=(n_chunks,),
        in_specs=[
            pl.BlockSpec((T * B, D), lambda t: (t, 0)),    # x chunk (double-buffered)
            pl.BlockSpec((D, G), lambda t: (0, 0)),        # W_ih^T (resident)
            pl.BlockSpec((H, G), lambda t: (0, 0)),        # W_hh^T (resident)
            pl.BlockSpec((1, G), lambda t: (0, 0)),        # bias
            pl.BlockSpec((B, H), lambda t: (0, 0)),        # h0
            pl.BlockSpec((B, H), lambda t: (0, 0)),        # c0
        ],
        out_specs=[
            pl.BlockSpec((1, B, H), lambda t: (0, 0, 0)),  # hn (resident)
            pl.BlockSpec((1, B, H), lambda t: (0, 0, 0)),  # cn (resident)
        ],
        scratch_shapes=[
            pltpu.VMEM((B, H), jnp.float32),               # h carry
            pltpu.VMEM((B, H), jnp.float32),               # c carry
            pltpu.VMEM((T * B, G), jnp.float32),           # chunk pre-activations
        ],
    )

    hn, cn = pl.pallas_call(
        _lstm_chunk_kernel,
        out_shape=(jax.ShapeDtypeStruct((1, B, H), jnp.float32),
                   jax.ShapeDtypeStruct((1, B, H), jnp.float32)),
        grid_spec=grid_spec,
        compiler_params=pltpu.CompilerParams(
            dimension_semantics=("arbitrary",),            # sequential recurrence
            vmem_limit_bytes=vmem_limit),
        cost_estimate=cost,
    )(x_flat, w_ih_t, w_hh_t, bias, h0_f, c0_f)
    return hn, cn


def _reference_forward(x_bsd, h0, c0, w_ih, w_hh, b_ih, b_hh):
    """Pure-JAX f32 reference mirroring torch.nn.LSTM (num_layers=1, batch_first)."""
    x = jnp.tanh(x_bsd)
    H = h0.shape[-1]

    def step(carry, x_t):
        h, c = carry
        gates = x_t @ w_ih.T + b_ih + h @ w_hh.T + b_hh
        i = jax.nn.sigmoid(gates[:, 0 * H:1 * H])
        f = jax.nn.sigmoid(gates[:, 1 * H:2 * H])
        g = jnp.tanh(gates[:, 2 * H:3 * H])
        o = jax.nn.sigmoid(gates[:, 3 * H:4 * H])
        c_new = f * c + i * g
        h_new = o * jnp.tanh(c_new)
        return (h_new, c_new), None

    (h_fin, c_fin), _ = jax.lax.scan(step, (h0[0], c0[0]),
                                     jnp.transpose(x, (1, 0, 2)))
    return h_fin[None], c_fin[None]


if __name__ == "__main__":
    # Small shapes consistent with the module (input_size -> D, question_ftrs -> H)
    B, S, D, H = 2, 8, 32, 32
    key = jax.random.PRNGKey(0)
    k_x, k1, k2, k3, k4 = jax.random.split(key, 5)

    x = jax.random.normal(k_x, (B, S, D), dtype=jnp.float32)

    # Deterministic LSTM parameters, PyTorch-style uniform(-1/sqrt(H), 1/sqrt(H))
    bound = 1.0 / jnp.sqrt(jnp.float32(H))
    w_ih = jax.random.uniform(k1, (4 * H, D), jnp.float32, -bound, bound)
    w_hh = jax.random.uniform(k2, (4 * H, H), jnp.float32, -bound, bound)
    b_ih = jax.random.uniform(k3, (4 * H,), jnp.float32, -bound, bound)
    b_hh = jax.random.uniform(k4, (4 * H,), jnp.float32, -bound, bound)

    # cache = init_cache(batch=B): zeros of shape (num_layers=1, B, H)
    h0 = jnp.zeros((1, B, H), jnp.float32)
    c0 = jnp.zeros((1, B, H), jnp.float32)

    # time_chunk=4 -> two grid steps at S=8, exercising the h/c scratch carry.
    hn, cn = qns_embedding_forward(x, h0, c0, w_ih, w_hh, b_ih, b_hh,
                                   time_chunk=4)
    hn, cn = jax.block_until_ready((hn, cn))

    hn_ref, cn_ref = _reference_forward(x, h0, c0, w_ih, w_hh, b_ih, b_hh)
    # bf16 MXU operands (f32 accumulate/elementwise) => loosened tolerance vs f32 ref.
    assert jnp.allclose(hn, hn_ref, atol=2e-2, rtol=2e-2), \
        float(jnp.max(jnp.abs(hn - hn_ref)))
    assert jnp.allclose(cn, cn_ref, atol=2e-2, rtol=2e-2), \
        float(jnp.max(jnp.abs(cn - cn_ref)))

    print("KERNEL_OK")
</pallas_src>

<mosaic_0001>
module attributes {stable_mosaic.version = 11 : i64} {
  func.func @_lstm_chunk_kernel(%arg0: i32, %arg1: memref<8x32xf32, #tpu.memory_space<vmem>>, %arg2: memref<32x128xbf16, #tpu.memory_space<vmem>>, %arg3: memref<32x128xbf16, #tpu.memory_space<vmem>>, %arg4: memref<1x128xf32, #tpu.memory_space<vmem>>, %arg5: memref<2x32xf32, #tpu.memory_space<vmem>>, %arg6: memref<2x32xf32, #tpu.memory_space<vmem>>, %arg7: memref<1x2x32xf32, #tpu.memory_space<vmem>>, %arg8: memref<1x2x32xf32, #tpu.memory_space<vmem>>, %arg9: memref<2x32xf32, #tpu.memory_space<vmem>>, %arg10: memref<2x32xf32, #tpu.memory_space<vmem>>, %arg11: memref<8x128xf32, #tpu.memory_space<vmem>>) attributes {dimension_semantics = [#tpu.dimension_semantics<arbitrary>], iteration_bounds = array<i64: 2>, scalar_prefetch = 0 : i64, scratch_operands = 3 : i64, tpu.core_type = #tpu.core_type<tc>, window_params = [{transform_indices = @transform_0, window_bounds = array<i64: 8, 32>}, {pipeline_mode = #tpu.pipeline_mode<synchronous>, transform_indices = @transform_1, window_bounds = array<i64: 32, 128>}, {pipeline_mode = #tpu.pipeline_mode<synchronous>, transform_indices = @transform_2, window_bounds = array<i64: 32, 128>}, {pipeline_mode = #tpu.pipeline_mode<synchronous>, transform_indices = @transform_3, window_bounds = array<i64: 1, 128>}, {pipeline_mode = #tpu.pipeline_mode<synchronous>, transform_indices = @transform_4, window_bounds = array<i64: 2, 32>}, {pipeline_mode = #tpu.pipeline_mode<synchronous>, transform_indices = @transform_5, window_bounds = array<i64: 2, 32>}, {pipeline_mode = #tpu.pipeline_mode<synchronous>, transform_indices = @transform_6, window_bounds = array<i64: 1, 2, 32>}, {pipeline_mode = #tpu.pipeline_mode<synchronous>, transform_indices = @transform_7, window_bounds = array<i64: 1, 2, 32>}]} {
    %c0_i32 = arith.constant 0 : i32
    %0 = arith.cmpi eq, %arg0, %c0_i32 : i32
    %1 = arith.extui %0 : i1 to i32
    %c0_i32_0 = arith.constant 0 : i32
    %2 = arith.cmpi ne, %1, %c0_i32_0 : i32
    scf.if %2 {
      %c0_45 = arith.constant 0 : index
      %c0_46 = arith.constant 0 : index
      %144 = vector.load %arg5[%c0_45, %c0_46] : memref<2x32xf32, #tpu.memory_space<vmem>>, vector<2x32xf32>
      %c0_47 = arith.constant 0 : index
      %c0_48 = arith.constant 0 : index
      %145 = vector.load %arg9[%c0_47, %c0_48] : memref<2x32xf32, #tpu.memory_space<vmem>>, vector<2x32xf32>
      tpu.vector_store %arg9[%c0_47, %c0_48], %144 {strides = array<i32>} : memref<2x32xf32, #tpu.memory_space<vmem>>, vector<2x32xf32>,
      %c0_49 = arith.constant 0 : index
      %c0_50 = arith.constant 0 : index
      %146 = vector.load %arg6[%c0_49, %c0_50] : memref<2x32xf32, #tpu.memory_space<vmem>>, vector<2x32xf32>
      %c0_51 = arith.constant 0 : index
      %c0_52 = arith.constant 0 : index
      %147 = vector.load %arg10[%c0_51, %c0_52] : memref<2x32xf32, #tpu.memory_space<vmem>>, vector<2x32xf32>
      tpu.vector_store %arg10[%c0_51, %c0_52], %146 {strides = array<i32>} : memref<2x32xf32, #tpu.memory_space<vmem>>, vector<2x32xf32>,
    } else {
    }
    %c0 = arith.constant 0 : index
    %c0_1 = arith.constant 0 : index
    %3 = vector.load %arg1[%c0, %c0_1] : memref<8x32xf32, #tpu.memory_space<vmem>>, vector<8x32xf32>
    %4 = math.tanh %3 : vector<8x32xf32>
    %5 = arith.truncf %4 : vector<8x32xf32> to vector<8x32xbf16>
    %c0_2 = arith.constant 0 : index
    %c0_3 = arith.constant 0 : index
    %6 = vector.load %arg2[%c0_2, %c0_3] : memref<32x128xbf16, #tpu.memory_space<vmem>>, vector<32x128xbf16>
    %cst = arith.constant dense<0.000000e+00> : vector<8x128xf32>
    %7 = tpu.matmul %5, %6, %cst {dimension_numbers = #tpu.dot_dimension_numbers<[1], [0], [0], [1], [0, 0, 1, 1], [], []>} : vector<8x32xbf16>, vector<32x128xbf16>, vector<8x128xf32> -> vector<8x128xf32>
    %c0_4 = arith.constant 0 : index
    %c0_5 = arith.constant 0 : index
    %8 = vector.load %arg4[%c0_4, %c0_5] : memref<1x128xf32, #tpu.memory_space<vmem>>, vector<1x128xf32>
    %9 = vector.broadcast %8 : vector<1x128xf32> to vector<8x128xf32>
    %10 = arith.addf %7, %9 : vector<8x128xf32>
    %c0_6 = arith.constant 0 : index
    %c0_7 = arith.constant 0 : index
    %11 = vector.load %arg11[%c0_6, %c0_7] : memref<8x128xf32, #tpu.memory_space<vmem>>, vector<8x128xf32>
    tpu.vector_store %arg11[%c0_6, %c0_7], %10 {strides = array<i32>} : memref<8x128xf32, #tpu.memory_space<vmem>>, vector<8x128xf32>,
    %c0_8 = arith.constant 0 : index
    %c0_9 = arith.constant 0 : index
    %12 = vector.load %arg3[%c0_8, %c0_9] : memref<32x128xbf16, #tpu.memory_space<vmem>>, vector<32x128xbf16>
    %c0_10 = arith.constant 0 : index
    %c0_11 = arith.constant 0 : index
    %13 = vector.load %arg9[%c0_10, %c0_11] : memref<2x32xf32, #tpu.memory_space<vmem>>, vector<2x32xf32>
    %c0_12 = arith.constant 0 : index
    %c0_13 = arith.constant 0 : index
    %14 = vector.load %arg10[%c0_12, %c0_13] : memref<2x32xf32, #tpu.memory_space<vmem>>, vector<2x32xf32>
    %c0_i32_14 = arith.constant 0 : i32
    %c2_i32 = arith.constant 2 : i32
    %15 = arith.muli %c0_i32_14, %c2_i32 : i32
    %16 = arith.index_cast %15 : i32 to index
    %c0_15 = arith.constant 0 : index
    %17 = vector.load %arg11[%16, %c0_15] : memref<8x128xf32, #tpu.memory_space<vmem>>, vector<2x128xf32>
    %18 = arith.truncf %13 : vector<2x32xf32> to vector<2x32xbf16>
    %cst_16 = arith.constant dense<0.000000e+00> : vector<2x128xf32>
    %19 = tpu.matmul %18, %12, %cst_16 {dimension_numbers = #tpu.dot_dimension_numbers<[1], [0], [0], [1], [0, 0, 1, 1], [], []>} : vector<2x32xbf16>, vector<32x128xbf16>, vector<2x128xf32> -> vector<2x128xf32>
    %20 = arith.addf %17, %19 : vector<2x128xf32>
    %21 = vector.extract_strided_slice %20 {offsets = [0, 32], sizes = [2, 32], strides = [1, 1]} : vector<2x128xf32> to vector<2x32xf32>
    %22 = arith.negf %21 : vector<2x32xf32>
    %23 = math.exp %22 : vector<2x32xf32>
    %cst_17 = arith.constant 1.000000e+00 : f32
    %24 = vector.broadcast %cst_17 : f32 to vector<2x32xf32>
    %25 = arith.addf %24, %23 : vector<2x32xf32>
    %26 = arith.divf %24, %25 : vector<2x32xf32>
    %27 = arith.mulf %26, %14 : vector<2x32xf32>
    %28 = vector.extract_strided_slice %20 {offsets = [0, 0], sizes = [2, 32], strides = [1, 1]} : vector<2x128xf32> to vector<2x32xf32>
    %29 = arith.negf %28 : vector<2x32xf32>
    %30 = math.exp %29 : vector<2x32xf32>
    %cst_18 = arith.constant 1.000000e+00 : f32
    %31 = vector.broadcast %cst_18 : f32 to vector<2x32xf32>
    %32 = arith.addf %31, %30 : vector<2x32xf32>
    %33 = arith.divf %31, %32 : vector<2x32xf32>
    %34 = vector.extract_strided_slice %20 {offsets = [0, 64], sizes = [2, 32], strides = [1, 1]} : vector<2x128xf32> to vector<2x32xf32>
    %35 = math.tanh %34 : vector<2x32xf32>
    %36 = arith.mulf %33, %35 : vector<2x32xf32>
    %37 = arith.addf %27, %36 : vector<2x32xf32>
    %38 = vector.extract_strided_slice %20 {offsets = [0, 96], sizes = [2, 32], strides = [1, 1]} : vector<2x128xf32> to vector<2x32xf32>
    %39 = arith.negf %38 : vector<2x32xf32>
    %40 = math.exp %39 : vector<2x32xf32>
    %cst_19 = arith.constant 1.000000e+00 : f32
    %41 = vector.broadcast %cst_19 : f32 to vector<2x32xf32>
    %42 = arith.addf %41, %40 : vector<2x32xf32>
    %43 = arith.divf %41, %42 : vector<2x32xf32>
    %44 = math.tanh %37 : vector<2x32xf32>
    %45 = arith.mulf %43, %44 : vector<2x32xf32>
    %c1_i32 = arith.constant 1 : i32
    %c2_i32_20 = arith.constant 2 : i32
    %46 = arith.muli %c1_i32, %c2_i32_20 : i32
    %47 = arith.index_cast %46 : i32 to index
    %c0_21 = arith.constant 0 : index
    %48 = vector.load %arg11[%47, %c0_21] : memref<8x128xf32, #tpu.memory_space<vmem>>, vector<2x128xf32>
    %49 = arith.truncf %45 : vector<2x32xf32> to vector<2x32xbf16>
    %cst_22 = arith.constant dense<0.000000e+00> : vector<2x128xf32>
    %50 = tpu.matmul %49, %12, %cst_22 {dimension_numbers = #tpu.dot_dimension_numbers<[1], [0], [0], [1], [0, 0, 1, 1], [], []>} : vector<2x32xbf16>, vector<32x128xbf16>, vector<2x128xf32> -> vector<2x128xf32>
    %51 = arith.addf %48, %50 : vector<2x128xf32>
    %52 = vector.extract_strided_slice %51 {offsets = [0, 32], sizes = [2, 32], strides = [1, 1]} : vector<2x128xf32> to vector<2x32xf32>
    %53 = arith.negf %52 : vector<2x32xf32>
    %54 = math.exp %53 : vector<2x32xf32>
    %cst_23 = arith.constant 1.000000e+00 : f32
    %55 = vector.broadcast %cst_23 : f32 to vector<2x32xf32>
    %56 = arith.addf %55, %54 : vector<2x32xf32>
    %57 = arith.divf %55, %56 : vector<2x32xf32>
    %58 = arith.mulf %57, %37 : vector<2x32xf32>
    %59 = vector.extract_strided_slice %51 {offsets = [0, 0], sizes = [2, 32], strides = [1, 1]} : vector<2x128xf32> to vector<2x32xf32>
    %60 = arith.negf %59 : vector<2x32xf32>
    %61 = math.exp %60 : vector<2x32xf32>
    %cst_24 = arith.constant 1.000000e+00 : f32
    %62 = vector.broadcast %cst_24 : f32 to vector<2x32xf32>
    %63 = arith.addf %62, %61 : vector<2x32xf32>
    %64 = arith.divf %62, %63 : vector<2x32xf32>
    %65 = vector.extract_strided_slice %51 {offsets = [0, 64], sizes = [2, 32], strides = [1, 1]} : vector<2x128xf32> to vector<2x32xf32>
    %66 = math.tanh %65 : vector<2x32xf32>
    %67 = arith.mulf %64, %66 : vector<2x32xf32>
    %68 = arith.addf %58, %67 : vector<2x32xf32>
    %69 = vector.extract_strided_slice %51 {offsets = [0, 96], sizes = [2, 32], strides = [1, 1]} : vector<2x128xf32> to vector<2x32xf32>
    %70 = arith.negf %69 : vector<2x32xf32>
    %71 = math.exp %70 : vector<2x32xf32>
    %cst_25 = arith.constant 1.000000e+00 : f32
    %72 = vector.broadcast %cst_25 : f32 to vector<2x32xf32>
    %73 = arith.addf %72, %71 : vector<2x32xf32>
    %74 = arith.divf %72, %73 : vector<2x32xf32>
    %75 = math.tanh %68 : vector<2x32xf32>
    %76 = arith.mulf %74, %75 : vector<2x32xf32>
    %c2_i32_26 = arith.constant 2 : i32
    %c2_i32_27 = arith.constant 2 : i32
    %77 = arith.muli %c2_i32_26, %c2_i32_27 : i32
    %78 = arith.index_cast %77 : i32 to index
    %c0_28 = arith.constant 0 : index
    %79 = vector.load %arg11[%78, %c0_28] : memref<8x128xf32, #tpu.memory_space<vmem>>, vector<2x128xf32>
    %80 = arith.truncf %76 : vector<2x32xf32> to vector<2x32xbf16>
    %cst_29 = arith.constant dense<0.000000e+00> : vector<2x128xf32>
    %81 = tpu.matmul %80, %12, %cst_29 {dimension_numbers = #tpu.dot_dimension_numbers<[1], [0], [0], [1], [0, 0, 1, 1], [], []>} : vector<2x32xbf16>, vector<32x128xbf16>, vector<2x128xf32> -> vector<2x128xf32>
    %82 = arith.addf %79, %81 : vector<2x128xf32>
    %83 = vector.extract_strided_slice %82 {offsets = [0, 32], sizes = [2, 32], strides = [1, 1]} : vector<2x128xf32> to vector<2x32xf32>
    %84 = arith.negf %83 : vector<2x32xf32>
    %85 = math.exp %84 : vector<2x32xf32>
    %cst_30 = arith.constant 1.000000e+00 : f32
    %86 = vector.broadcast %cst_30 : f32 to vector<2x32xf32>
    %87 = arith.addf %86, %85 : vector<2x32xf32>
    %88 = arith.divf %86, %87 : vector<2x32xf32>
    %89 = arith.mulf %88, %68 : vector<2x32xf32>
    %90 = vector.extract_strided_slice %82 {offsets = [0, 0], sizes = [2, 32], strides = [1, 1]} : vector<2x128xf32> to vector<2x32xf32>
    %91 = arith.negf %90 : vector<2x32xf32>
    %92 = math.exp %91 : vector<2x32xf32>
    %cst_31 = arith.constant 1.000000e+00 : f32
    %93 = vector.broadcast %cst_31 : f32 to vector<2x32xf32>
    %94 = arith.addf %93, %92 : vector<2x32xf32>
    %95 = arith.divf %93, %94 : vector<2x32xf32>
    %96 = vector.extract_strided_slice %82 {offsets = [0, 64], sizes = [2, 32], strides = [1, 1]} : vector<2x128xf32> to vector<2x32xf32>
    %97 = math.tanh %96 : vector<2x32xf32>
    %98 = arith.mulf %95, %97 : vector<2x32xf32>
    %99 = arith.addf %89, %98 : vector<2x32xf32>
    %100 = vector.extract_strided_slice %82 {offsets = [0, 96], sizes = [2, 32], strides = [1, 1]} : vector<2x128xf32> to vector<2x32xf32>
    %101 = arith.negf %100 : vector<2x32xf32>
    %102 = math.exp %101 : vector<2x32xf32>
    %cst_32 = arith.constant 1.000000e+00 : f32
    %103 = vector.broadcast %cst_32 : f32 to vector<2x32xf32>
    %104 = arith.addf %103, %102 : vector<2x32xf32>
    %105 = arith.divf %103, %104 : vector<2x32xf32>
    %106 = math.tanh %99 : vector<2x32xf32>
    %107 = arith.mulf %105, %106 : vector<2x32xf32>
    %c3_i32 = arith.constant 3 : i32
    %c2_i32_33 = arith.constant 2 : i32
    %108 = arith.muli %c3_i32, %c2_i32_33 : i32
    %109 = arith.index_cast %108 : i32 to index
    %c0_34 = arith.constant 0 : index
    %110 = vector.load %arg11[%109, %c0_34] : memref<8x128xf32, #tpu.memory_space<vmem>>, vector<2x128xf32>
    %111 = arith.truncf %107 : vector<2x32xf32> to vector<2x32xbf16>
    %cst_35 = arith.constant dense<0.000000e+00> : vector<2x128xf32>
    %112 = tpu.matmul %111, %12, %cst_35 {dimension_numbers = #tpu.dot_dimension_numbers<[1], [0], [0], [1], [0, 0, 1, 1], [], []>} : vector<2x32xbf16>, vector<32x128xbf16>, vector<2x128xf32> -> vector<2x128xf32>
    %113 = arith.addf %110, %112 : vector<2x128xf32>
    %114 = vector.extract_strided_slice %113 {offsets = [0, 32], sizes = [2, 32], strides = [1, 1]} : vector<2x128xf32> to vector<2x32xf32>
    %115 = arith.negf %114 : vector<2x32xf32>
    %116 = math.exp %115 : vector<2x32xf32>
    %cst_36 = arith.constant 1.000000e+00 : f32
    %117 = vector.broadcast %cst_36 : f32 to vector<2x32xf32>
    %118 = arith.addf %117, %116 : vector<2x32xf32>
    %119 = arith.divf %117, %118 : vector<2x32xf32>
    %120 = arith.mulf %119, %99 : vector<2x32xf32>
    %121 = vector.extract_strided_slice %113 {offsets = [0, 0], sizes = [2, 32], strides = [1, 1]} : vector<2x128xf32> to vector<2x32xf32>
    %122 = arith.negf %121 : vector<2x32xf32>
    %123 = math.exp %122 : vector<2x32xf32>
    %cst_37 = arith.constant 1.000000e+00 : f32
    %124 = vector.broadcast %cst_37 : f32 to vector<2x32xf32>
    %125 = arith.addf %124, %123 : vector<2x32xf32>
    %126 = arith.divf %124, %125 : vector<2x32xf32>
    %127 = vector.extract_strided_slice %113 {offsets = [0, 64], sizes = [2, 32], strides = [1, 1]} : vector<2x128xf32> to vector<2x32xf32>
    %128 = math.tanh %127 : vector<2x32xf32>
    %129 = arith.mulf %126, %128 : vector<2x32xf32>
    %130 = arith.addf %120, %129 : vector<2x32xf32>
    %131 = vector.extract_strided_slice %113 {offsets = [0, 96], sizes = [2, 32], strides = [1, 1]} : vector<2x128xf32> to vector<2x32xf32>
    %132 = arith.negf %131 : vector<2x32xf32>
    %133 = math.exp %132 : vector<2x32xf32>
    %cst_38 = arith.constant 1.000000e+00 : f32
    %134 = vector.broadcast %cst_38 : f32 to vector<2x32xf32>
    %135 = arith.addf %134, %133 : vector<2x32xf32>
    %136 = arith.divf %134, %135 : vector<2x32xf32>
    %137 = math.tanh %130 : vector<2x32xf32>
    %138 = arith.mulf %136, %137 : vector<2x32xf32>
    %c4_i32 = arith.constant 4 : i32
    %c0_39 = arith.constant 0 : index
    %c0_40 = arith.constant 0 : index
    %139 = vector.load %arg9[%c0_39, %c0_40] : memref<2x32xf32, #tpu.memory_space<vmem>>, vector<2x32xf32>
    tpu.vector_store %arg9[%c0_39, %c0_40], %138 {strides = array<i32>} : memref<2x32xf32, #tpu.memory_space<vmem>>, vector<2x32xf32>,
    %c0_41 = arith.constant 0 : index
    %c0_42 = arith.constant 0 : index
    %140 = vector.load %arg10[%c0_41, %c0_42] : memref<2x32xf32, #tpu.memory_space<vmem>>, vector<2x32xf32>
    tpu.vector_store %arg10[%c0_41, %c0_42], %130 {strides = array<i32>} : memref<2x32xf32, #tpu.memory_space<vmem>>, vector<2x32xf32>,
    %c1_i32_43 = arith.constant 1 : i32
    %141 = arith.cmpi eq, %arg0, %c1_i32_43 : i32
    %142 = arith.extui %141 : i1 to i32
    %c0_i32_44 = arith.constant 0 : i32
    %143 = arith.cmpi ne, %142, %c0_i32_44 : i32
    scf.if %143 {
      %c0_45 = arith.constant 0 : index
      %c0_46 = arith.constant 0 : index
      %c0_47 = arith.constant 0 : index
      %144 = vector.load %arg7[%c0_45, %c0_46, %c0_47] : memref<1x2x32xf32, #tpu.memory_space<vmem>>, vector<1x2x32xf32>
      %145 = vector.shape_cast %144 : vector<1x2x32xf32> to vector<2x32xf32>
      %146 = vector.shape_cast %138 : vector<2x32xf32> to vector<1x2x32xf32>
      tpu.vector_store %arg7[%c0_45, %c0_46, %c0_47], %146 {strides = array<i32>} : memref<1x2x32xf32, #tpu.memory_space<vmem>>, vector<1x2x32xf32>,
      %c0_48 = arith.constant 0 : index
      %c0_49 = arith.constant 0 : index
      %c0_50 = arith.constant 0 : index
      %147 = vector.load %arg8[%c0_48, %c0_49, %c0_50] : memref<1x2x32xf32, #tpu.memory_space<vmem>>, vector<1x2x32xf32>
      %148 = vector.shape_cast %147 : vector<1x2x32xf32> to vector<2x32xf32>
      %149 = vector.shape_cast %130 : vector<2x32xf32> to vector<1x2x32xf32>
      tpu.vector_store %arg8[%c0_48, %c0_49, %c0_50], %149 {strides = array<i32>} : memref<1x2x32xf32, #tpu.memory_space<vmem>>, vector<1x2x32xf32>,
    } else {
    }
    return
  }
  func.func @transform_0(%arg0: i32) -> (i32, i32) {
    %c0_i32 = arith.constant 0 : i32
    %c0_i32_0 = arith.constant 0 : i32
    return %arg0, %c0_i32 : i32, i32
  }
  func.func @transform_1(%arg0: i32) -> (i32, i32) {
    %c0_i32 = arith.constant 0 : i32
    %c0_i32_0 = arith.constant 0 : i32
    %c0_i32_1 = arith.constant 0 : i32
    return %c0_i32, %c0_i32_0 : i32, i32
  }
  func.func @transform_2(%arg0: i32) -> (i32, i32) {
    %c0_i32 = arith.constant 0 : i32
    %c0_i32_0 = arith.constant 0 : i32
    %c0_i32_1 = arith.constant 0 : i32
    return %c0_i32, %c0_i32_0 : i32, i32
  }
  func.func @transform_3(%arg0: i32) -> (i32, i32) {
    %c0_i32 = arith.constant 0 : i32
    %c0_i32_0 = arith.constant 0 : i32
    %c0_i32_1 = arith.constant 0 : i32
    return %c0_i32, %c0_i32_0 : i32, i32
  }
  func.func @transform_4(%arg0: i32) -> (i32, i32) {
    %c0_i32 = arith.constant 0 : i32
    %c0_i32_0 = arith.constant 0 : i32
    %c0_i32_1 = arith.constant 0 : i32
    return %c0_i32, %c0_i32_0 : i32, i32
  }
  func.func @transform_5(%arg0: i32) -> (i32, i32) {
    %c0_i32 = arith.constant 0 : i32
    %c0_i32_0 = arith.constant 0 : i32
    %c0_i32_1 = arith.constant 0 : i32
    return %c0_i32, %c0_i32_0 : i32, i32
  }
  func.func @transform_6(%arg0: i32) -> (i32, i32, i32) {
    %c0_i32 = arith.constant 0 : i32
    %c0_i32_0 = arith.constant 0 : i32
    %c0_i32_1 = arith.constant 0 : i32
    %c0_i32_2 = arith.constant 0 : i32
    return %c0_i32, %c0_i32_0, %c0_i32_1 : i32, i32, i32
  }
  func.func @transform_7(%arg0: i32) -> (i32, i32, i32) {
    %c0_i32 = arith.constant 0 : i32
    %c0_i32_0 = arith.constant 0 : i32
    %c0_i32_1 = arith.constant 0 : i32
    %c0_i32_2 = arith.constant 0 : i32
    return %c0_i32, %c0_i32_0, %c0_i32_1 : i32, i32, i32
  }
}

</mosaic_0001>

<bundles_post_ra>
// kernel: qns_embedding_forward.1
= control target key start
LH: loop header
LB: loop body
LE: loop exit
PB: predicated region body
PF: predicated region fallthrough
CT: control target
= control target key end

     0   :  { %13 = vsyncpa [#allocation6], 0  ;;  %s957_s0 = inlined_call_operand.vmem [shape: f32[16,32], index: 0, kind: input, shape index: {}]   ;;  %s958_s1 = inlined_call_operand.vmem [shape: bf16[32,128], index: 1, kind: input, shape index: {}]   ;;  %s959_s2 = inlined_call_operand.vmem [shape: bf16[32,128], index: 2, kind: input, shape index: {}]   ;;  %s960_s3 = inlined_call_operand.vmem [shape: f32[1,128], index: 3, kind: input, shape index: {}]   ;;  %s961_s4 = inlined_call_operand.vmem [shape: f32[2,32], index: 4, kind: input, shape index: {}]   ;;  %s962_s5 = inlined_call_operand.vmem [shape: f32[2,32], index: 5, kind: input, shape index: {}]   ;;  %s963_s6 = inlined_call_operand.hbm [shape: f32[1,2,32], index: 6, kind: output, shape index: {0}]   ;;  %s964_s7 = inlined_call_operand.hbm [shape: f32[1,2,32], index: 7, kind: output, shape index: {1}]  }
   0x1   :  { %14 = vsyncpa [#allocation8], 0  ;;  %s875_s24 = smov 0  }
   0x2 LB: > { %s881_s25 = sadd.s32 4294967295, %s828_s24   ;;  %p659_p0 = scmp.ge.s32.totalorder %s828_s24, 1  ;;  %s828_s24 = sphi %s875_s24, %s20_s24  }
   0x3   : > { %p231_p1 = scmp.lt.s32.totalorder %s828_s24, 3 }
   0x5   : > { %p232_p2 = pnand %p659_p0, %p231_p1 }
   0x6   : > { %p257_p3 = scmp.lt.s32.totalorder (!%p232_p2), %s881_s25, 1  ;;  %p661_p4 = scmp.ne.s32.totalorder (!%p232_p2), %s881_s25, 0 }
   0x7   : > { %235 = sbr.rel (%p232_p2) target bundleno = 2385 (0x951), region = 44 }
   0xc   : > { %s258_s26 = scalar_select %p257_p3, %s881_s25, 1 }
   0xd   : > { %265 = sbr.rel (%p661_p4) target bundleno = 21 (0x15), region = 48 }
   0xe   : > { %s660_s27 = sshll.u32 %s258_s26, 3 }
   0xf   : > { %s260_s30 = scalar_lea.vmem %s957_s0, %s660_s27 }
  0x12   : > { %v266_v0 = vld [vmem:[%s961_s4] sm:$0x3]  ;;  %vm267_vm0 = vcmask 254976  }
  0x13   : > { %v269_v1 = vld [vmem:[%s962_s5] sm:$0x3]  ;;  %268 = vst.msk [vmem:[#allocation2] sm:$0x3] %vm267_vm0, %v266_v0 }
  0x14   : > { %270 = vst.msk [vmem:[#allocation3] sm:$0x3] %vm267_vm0, %v269_v1 }
  0x15 PF: > { %v695_v2 = vld [vmem:[%s958_s1 + $0x8] sm:$0xff]  ;;  %v694_v4 = vld [vmem:[%s958_s1] sm:$0xff]  ;;  %vm294_vm1 = vcmask 261120   ;;  %s830_s22 = smov 64   ;;  %s831_s23 = smov 32  }
  0x16   : > { %v697_v3 = vld [vmem:[%s959_s2 + $0x8] sm:$0xff]  ;;  %v271_v5 = vld [vmem:[%s260_s30] sm:$0xff]  ;;  %304 = vmatpush.bf16.msra.mxu0 %v695_v2  ;;  %s832_s26 = smov 96   ;;  %p687_p5 = scmp.ne.s32.totalorder %s881_s25, 1 }
  0x17   : > { %341 = vmatpush.bf16.msra.mxu1 %v697_v3  ;;  %v696_v6 = vld [vmem:[%s959_s2] sm:$0xff]  ;;  %724 = vtanh.f32 %v271_v5  ;;  %404 = vmatpush.bf16.msra.mxu2 %v697_v3 }
  0x18   : > { %463 = vmatpush.bf16.msra.mxu3 %v697_v3  ;;  %v723_v11 = vld [vmem:[%s960_s3] ss:$0 sm:$0xff] }
  0x1a   : > { %v316_v7 = vld [vmem:[#allocation2] sm:$0x3]  ;;  %305 = vmatpush.bf16.msra.mxu0 %v694_v4 }
  0x1b   : > { %v319_v8 = vpack.c.bf16 %v316_v7, %v316_v7  ;;  %342 = vmatpush.bf16.msra.mxu1 %v696_v6  ;;  %405 = vmatpush.bf16.msra.mxu2 %v696_v6  ;;  %v317_v20 = vld [vmem:[#allocation3] sm:$0x3] }
  0x1c   : > { %464 = vmatpush.bf16.msra.mxu3 %v696_v6 }
  0x1d   : > { %v725_v9 = vpop.eup %724 }
  0x1e   : > { %522 = vmatpush.bf16.msrb.mxu0 %v697_v3  ;;  %v273_v10 = vpack.c.bf16 %v725_v9, %v725_v9  ;;  %679 = vmatmul.msk.bf16.vlgmr.msra.gmra.mxu1 %vm294_vm1, %v319_v8 }
  0x20   : > { %670 = vmatmul.msk.bf16.vlgmr.msra.gmra.mxu0 %vm294_vm1, %v273_v10 }
  0x22   : > { %523 = vmatpush.bf16.msrb.mxu0 %v696_v6 }
  0x9b   : > { %v344_v12 = vpop.f32.mrf.mxu1 }
  0x9d   : > { %v307_v13 = vpop.f32.mrf.mxu0 }
  0x9e   : > { %v308_v14 = vadd.f32 %v723_v11, %v307_v13 }
  0xa0   : > { %311 = vst [vmem:[#allocation4] sm:$0xff] %v308_v14 }
  0xa3   : > { %v346_v15 = vpop.f32.mrf.mxu1 }
  0xa5   : > { %v309_v16 = vpop.f32.mrf.mxu0 }
  0xa7   : > { %v318_v17 = vld [vmem:[#allocation4] sm:$0x3]  ;;  %v390_v45 = vld [vmem:[#allocation4 + $0x2] sm:$0x3]  ;;  %v449_v9 = vld [vmem:[#allocation4 + $0x4] sm:$0x3] }
  0xa8   : > { %v348_v18 = vadd.f32 %v344_v12, %v318_v17 }
  0xaa   : > { %726 = vtanh.f32 %v348_v18  ;;  %v680_v21 = vmul.f32 -1.442695, %v348_v18 }
  0xac   : > { %728 = vpow2.f32 %v680_v21 }
  0xb0   : > { %v727_v19 = vpop.eup %726 }
  0xb1   : > { %375 = vrot.lane.b32.xlu0 %v727_v19, %s830_s22 }
  0xb2   : > { %v729_v22 = vpop.eup %728 }
  0xb3   : > { %v352_v23 = vadd.f32 1.0, %v729_v22 }
  0xb5   : > { %730 = vrcp.f32 %v352_v23  ;;  %v364_v29 = vand.u32 2147483648, %v352_v23  ;;  %vm358_vm3 = vweird.f32 %v352_v23  ;;  %v362_v30 = vand.u32 2147483647, %v352_v23 }
  0xb7   : > { %v365_v32 = vor.u32 1.1754944e-38, %v364_v29  ;;  %vm363_vm5 = vcmp.eq.f32.partialorder %v362_v30, 8.507059e+37 }
  0xb9   : > { %369 = vrot.lane.b32.xlu0 %v317_v20, %s831_s23 }
  0xbb   : > { %v731_v24 = vpop.eup %730 }
  0xbc   : > { %v354_v25 = vmul.f32 %v731_v24, %v352_v23  ;;  %vm359_vm2 = vweird.f32 %v731_v24 }
  0xbd   : > { %vm360_vm4 = vmor %vm358_vm3, %vm359_vm2  ;;  %vm571_vm2 = vcmask 254976  }
  0xbe   : > { %v355_v26 = vsub.f32 1.0, %v354_v25 }
  0xc0   : > { %v356_v27 = vmul.f32 %v731_v24, %v355_v26 }
  0xc2   : > { %v357_v28 = vadd.f32 %v731_v24, %v356_v27 }
  0xc4   : > { %v361_v31 = vsel %vm360_vm4, %v731_v24, %v357_v28 }
  0xc5   : > { %v366_v34 = vsel %vm363_vm5, %v365_v32, %v361_v31 }
 0x123   : > { %v376_v33 = vpop.permute.xlu0 %375 }
 0x124   : > { %v378_v35 = vmul.f32 %v376_v33, %v366_v34 }
 0x126   : > { %380 = vrot.lane.b32.xlu1 %v378_v35, %s831_s23 }
 0x12b   : > { %v370_v36 = vpop.permute.xlu0 %369 }
 0x12c   : > { %v372_v37 = vmul.f32 %v370_v36, %v366_v34 }
 0x198   : > { %v381_v38 = vpop.permute.xlu1 %380 }
 0x199   : > { %v383_v39 = vadd.f32 %v381_v38, %v372_v37  ;;  %v508_v37 = vld [vmem:[#allocation4 + $0x6] sm:$0x3] }
 0x19b   : > { %732 = vtanh.f32 %v383_v39 }
 0x1a1   : > { %v733_v40 = vpop.eup %732 }
 0x1a2   : > { %386 = vrot.lane.b32.xlu1 %v733_v40, %s830_s22 }
 0x214   : > { %v387_v41 = vpop.permute.xlu1 %386 }
 0x215   : > { %v389_v42 = vmul.f32 %v387_v41, %v366_v34 }
 0x217   : > { %v391_v43 = vpack.c.bf16 %v389_v42, %v389_v42 }
 0x219   : > { %393 = vrot.lane.b32.xlu2 %v391_v43, %s831_s23 }
 0x273   : > { %v394_v44 = vpop.permute.xlu2 %393 }
 0x274   : > { %681 = vmatmul.msk.bf16.vlgmr.msra.gmra.mxu2 %vm294_vm1, %v394_v44 }
 0x2f7   : > { %v407_v46 = vpop.f32.mrf.mxu2 }
 0x2f8   : > { %v411_v47 = vadd.f32 %v407_v46, %v390_v45 }
 0x2fa   : > { %734 = vtanh.f32 %v411_v47  ;;  %v682_v50 = vmul.f32 -1.442695, %v411_v47 }
 0x2fc   : > { %736 = vpow2.f32 %v682_v50 }
 0x2ff   : > { %v409_v48 = vpop.f32.mrf.mxu2 }
 0x300   : > { %v735_v49 = vpop.eup %734 }
 0x301   : > { %434 = vrot.lane.b32.xlu2 %v735_v49, %s830_s22 }
 0x302   : > { %v737_v51 = vpop.eup %736 }
 0x303   : > { %v415_v52 = vadd.f32 1.0, %v737_v51 }
 0x305   : > { %738 = vrcp.f32 %v415_v52  ;;  %v427_v58 = vand.u32 2147483648, %v415_v52  ;;  %vm421_vm7 = vweird.f32 %v415_v52  ;;  %v425_v59 = vand.u32 2147483647, %v415_v52 }
 0x307   : > { %v428_v61 = vor.u32 1.1754944e-38, %v427_v58  ;;  %vm426_vm9 = vcmp.eq.f32.partialorder %v425_v59, 8.507059e+37 }
 0x30b   : > { %v739_v53 = vpop.eup %738 }
 0x30c   : > { %v417_v54 = vmul.f32 %v739_v53, %v415_v52  ;;  %vm422_vm6 = vweird.f32 %v739_v53 }
 0x30d   : > { %vm423_vm8 = vmor %vm421_vm7, %vm422_vm6 }
 0x30e   : > { %v418_v55 = vsub.f32 1.0, %v417_v54 }
 0x310   : > { %v419_v56 = vmul.f32 %v739_v53, %v418_v55 }
 0x312   : > { %v420_v57 = vadd.f32 %v739_v53, %v419_v56 }
 0x314   : > { %v424_v60 = vsel %vm423_vm8, %v739_v53, %v420_v57 }
 0x315   : > { %v429_v63 = vsel %vm426_vm9, %v428_v61, %v424_v60 }
 0x316   : > { %v431_v1 = vmul.f32 %v429_v63, %v383_v39 }
 0x35b   : > { %v435_v62 = vpop.permute.xlu2 %434 }
 0x35c   : > { %v437_v0 = vmul.f32 %v435_v62, %v429_v63 }
 0x35e   : > { %439 = vrot.lane.b32.xlu0 %v437_v0, %s831_s23 }
 0x3d0   : > { %v440_v2 = vpop.permute.xlu0 %439 }
 0x3d1   : > { %v442_v3 = vadd.f32 %v440_v2, %v431_v1 }
 0x3d3   : > { %740 = vtanh.f32 %v442_v3 }
 0x3d9   : > { %v741_v4 = vpop.eup %740 }
 0x3da   : > { %445 = vrot.lane.b32.xlu1 %v741_v4, %s830_s22 }
 0x44c   : > { %v446_v5 = vpop.permute.xlu1 %445 }
 0x44d   : > { %v448_v6 = vmul.f32 %v446_v5, %v429_v63 }
 0x44f   : > { %v450_v7 = vpack.c.bf16 %v448_v6, %v448_v6 }
 0x451   : > { %452 = vrot.lane.b32.xlu2 %v450_v7, %s831_s23 }
 0x4ab   : > { %v453_v8 = vpop.permute.xlu2 %452 }
 0x4ac   : > { %683 = vmatmul.msk.bf16.vlgmr.msra.gmra.mxu3 %vm294_vm1, %v453_v8 }
 0x52f   : > { %v466_v10 = vpop.f32.mrf.mxu3 }
 0x530   : > { %v470_v11 = vadd.f32 %v466_v10, %v449_v9 }
 0x532   : > { %742 = vtanh.f32 %v470_v11  ;;  %v684_v14 = vmul.f32 -1.442695, %v470_v11 }
 0x534   : > { %744 = vpow2.f32 %v684_v14 }
 0x537   : > { %v468_v12 = vpop.f32.mrf.mxu3 }
 0x538   : > { %v743_v13 = vpop.eup %742 }
 0x539   : > { %493 = vrot.lane.b32.xlu0 %v743_v13, %s830_s22 }
 0x53a   : > { %v745_v15 = vpop.eup %744 }
 0x53b   : > { %v474_v16 = vadd.f32 1.0, %v745_v15 }
 0x53d   : > { %746 = vrcp.f32 %v474_v16  ;;  %v486_v22 = vand.u32 2147483648, %v474_v16  ;;  %vm480_vm11 = vweird.f32 %v474_v16  ;;  %v484_v23 = vand.u32 2147483647, %v474_v16 }
 0x53f   : > { %v487_v25 = vor.u32 1.1754944e-38, %v486_v22  ;;  %vm485_vm13 = vcmp.eq.f32.partialorder %v484_v23, 8.507059e+37 }
 0x543   : > { %v747_v17 = vpop.eup %746 }
 0x544   : > { %v476_v18 = vmul.f32 %v747_v17, %v474_v16  ;;  %vm481_vm10 = vweird.f32 %v747_v17 }
 0x545   : > { %vm482_vm12 = vmor %vm480_vm11, %vm481_vm10 }
 0x546   : > { %v477_v19 = vsub.f32 1.0, %v476_v18 }
 0x548   : > { %v478_v20 = vmul.f32 %v747_v17, %v477_v19 }
 0x54a   : > { %v479_v21 = vadd.f32 %v747_v17, %v478_v20 }
 0x54c   : > { %v483_v24 = vsel %vm482_vm12, %v747_v17, %v479_v21 }
 0x54d   : > { %v488_v27 = vsel %vm485_vm13, %v487_v25, %v483_v24 }
 0x54e   : > { %v490_v29 = vmul.f32 %v488_v27, %v442_v3 }
 0x5ab   : > { %v494_v26 = vpop.permute.xlu0 %493 }
 0x5ac   : > { %v496_v28 = vmul.f32 %v494_v26, %v488_v27 }
 0x5ae   : > { %498 = vrot.lane.b32.xlu1 %v496_v28, %s831_s23 }
 0x620   : > { %v499_v30 = vpop.permute.xlu1 %498 }
 0x621   : > { %v501_v31 = vadd.f32 %v499_v30, %v490_v29 }
 0x623   : > { %748 = vtanh.f32 %v501_v31 }
 0x629   : > { %v749_v32 = vpop.eup %748 }
 0x62a   : > { %504 = vrot.lane.b32.xlu2 %v749_v32, %s830_s22 }
 0x684   : > { %v505_v33 = vpop.permute.xlu2 %504 }
 0x685   : > { %v507_v34 = vmul.f32 %v505_v33, %v488_v27 }
 0x687   : > { %v509_v35 = vpack.c.bf16 %v507_v34, %v507_v34 }
 0x689   : > { %511 = vrot.lane.b32.xlu0 %v509_v35, %s831_s23 }
 0x6fb   : > { %v512_v36 = vpop.permute.xlu0 %511 }
 0x6fc   : > { %685 = vmatmul.msk.bf16.vlgmr.msrb.gmra.mxu0 %vm294_vm1, %v512_v36 }
 0x779   : > { %v525_v38 = vpop.f32.mrf.mxu0 }
 0x77a   : > { %v529_v39 = vadd.f32 %v525_v38, %v508_v37 }
 0x77c   : > { %750 = vtanh.f32 %v529_v39  ;;  %v686_v42 = vmul.f32 -1.442695, %v529_v39 }
 0x77e   : > { %752 = vpow2.f32 %v686_v42 }
 0x781   : > { %v527_v40 = vpop.f32.mrf.mxu0 }
 0x782   : > { %v751_v41 = vpop.eup %750 }
 0x783   : > { %552 = vrot.lane.b32.xlu1 %v751_v41, %s830_s22 }
 0x784   : > { %v753_v43 = vpop.eup %752 }
 0x785   : > { %v533_v44 = vadd.f32 1.0, %v753_v43 }
 0x787   : > { %754 = vrcp.f32 %v533_v44  ;;  %v545_v50 = vand.u32 2147483648, %v533_v44  ;;  %vm539_vm15 = vweird.f32 %v533_v44  ;;  %v543_v51 = vand.u32 2147483647, %v533_v44 }
 0x789   : > { %v546_v53 = vor.u32 1.1754944e-38, %v545_v50  ;;  %vm544_vm1 = vcmp.eq.f32.partialorder %v543_v51, 8.507059e+37 }
 0x78d   : > { %v755_v45 = vpop.eup %754 }
 0x78e   : > { %v535_v46 = vmul.f32 %v755_v45, %v533_v44  ;;  %vm540_vm14 = vweird.f32 %v755_v45 }
 0x78f   : > { %vm541_vm0 = vmor %vm539_vm15, %vm540_vm14 }
 0x790   : > { %v536_v47 = vsub.f32 1.0, %v535_v46 }
 0x792   : > { %v537_v48 = vmul.f32 %v755_v45, %v536_v47 }
 0x794   : > { %v538_v49 = vadd.f32 %v755_v45, %v537_v48 }
 0x796   : > { %v542_v52 = vsel %vm541_vm0, %v755_v45, %v538_v49 }
 0x797   : > { %v547_v55 = vsel %vm544_vm1, %v546_v53, %v542_v52 }
 0x798   : > { %v549_v57 = vmul.f32 %v547_v55, %v501_v31 }
 0x7f5   : > { %v553_v54 = vpop.permute.xlu1 %552 }
 0x7f6   : > { %v555_v56 = vmul.f32 %v553_v54, %v547_v55 }
 0x7f8   : > { %557 = vrot.lane.b32.xlu2 %v555_v56, %s831_s23 }
 0x852   : > { %v558_v58 = vpop.permute.xlu2 %557 }
 0x853   : > { %v560_v59 = vadd.f32 %v558_v58, %v549_v57 }
 0x855   : > { %756 = vtanh.f32 %v560_v59  ;;  %574 = vrot.lane.b32.xlu2 %v560_v59, %s832_s26 }
 0x85b   : > { %v757_v60 = vpop.eup %756 }
 0x85c   : > { %563 = vrot.lane.b32.xlu0 %v757_v60, %s830_s22 }
 0x8af   : > { %v575_v61 = vpop.permute.xlu2 %574 }
 0x8b0   : > { %577 = vst.msk [vmem:[#allocation3] sm:$0x3] %vm571_vm2, %v575_v61 }
 0x8ce   : > { %v564_v62 = vpop.permute.xlu0 %563 }
 0x8cf   : > { %v566_v63 = vmul.f32 %v564_v62, %v547_v55 }
 0x8d1   : > { %568 = vrot.lane.b32.xlu1 %v566_v63, %s831_s23 }
 0x940   : > { %581 = sbr.rel (%p687_p5) target bundleno = 2375 (0x947), region = 52 }
 0x943   : > { %v569_v0 = vpop.permute.xlu1 %568 }
 0x944   : > { %572 = vst.msk [vmem:[#allocation2] sm:$0x3] %vm571_vm2, %v569_v0 }
 0x945   : > { %582 = vst.msk [vmem:[#allocation5] sm:$0x3] %vm571_vm2, %v569_v0 }
 0x946   : > { %583 = vst.msk [vmem:[#allocation7] sm:$0x3] %vm571_vm2, %v575_v61 }
 0x947 PF: > { %p706_p6 = scmp.eq.s32.totalorder %s881_s25, 1  ;;  %s833_s27 = smov [#allocation5]  }
 0x948   : > { %s590_s28 = sshll.u32 %s833_s27, 4  ;;  %s592_s8 = sshll.u32 %s963_s6, 4  ;;  %s591_s28 = int_to_ptr.vmem [resolvable:$true] %s590_s28  ;;  %s593_s8 = int_to_ptr.hbm [resolvable:$true] %s592_s8 }
 0x949   : > { %699 = dma.vmem_to_hbm [thread:$0]  (%p706_p6), %s591_s28, 32, %s593_s8, [#allocation6]  }
 0x94a   : > { %s604_s11 = sshll.u32 %s964_s7, 4  ;;  %s834_s12 = smov [#allocation7]   ;;  %s605_s11 = int_to_ptr.hbm [resolvable:$true] %s604_s11 }
 0x94b   : > { %s602_s13 = sshll.u32 %s834_s12, 4  ;;  %s603_s13 = int_to_ptr.vmem [resolvable:$true] %s602_s13 }
 0x94c   : > { %701 = dma.vmem_to_hbm [thread:$0]  (%p706_p6), %s603_s13, 32, %s605_s11, [#allocation8]  }
 0x94d   : > { %819 = dma.done.wait (%p706_p6), [#allocation6], 32  }
 0x94e   : > { %821 = vsyncadd (%p706_p6), [#allocation6], 4294967264 }
 0x94f   : > { %823 = dma.done.wait (%p706_p6), [#allocation8], 32  }
 0x950   : > { %825 = vsyncadd (%p706_p6), [#allocation8], 4294967264 }
 0x951 PF: > { %s20_s24 = sadd.s32 1, %s828_s24  }
 0x952   : > { %p17_p7 = scmp.ge.s32.totalorder %s20_s24, 4  }
 0x954   :  { %19 = sbr.rel (!%p17_p7) target bundleno = 2 (0x2), region = 87 }
 0x959   :  { %623 = vsyncpa [#allocation6], 1 }
 0x95a   :  { %625 = vsyncpa [#allocation6 + $0x1], 1 }
 0x95b   :  { %626 = vsyncpa [#allocation8], 1 }

</bundles_post_ra>
